<compile_context>
chip_gen: v5e
topology: v5e:2x2
jax: 0.10.0
libtpu: 0.0.40
codegen_flags: <defaults>
</compile_context>

<pallas_src>
import functools

import jax
import jax.numpy as jnp
from jax.experimental import pallas as pl
from jax.experimental.pallas import tpu as pltpu


def _round_up(n, m):
    return ((n + m - 1) // m) * m


# ---------------------------------------------------------------------------
# Kernel factory
# ---------------------------------------------------------------------------
def _make_block_kernel(n_layers, in_dim, widths, tb, row_chunk, use_bf16):
    """MLP kernel: n_layers Linear layers, tanh after all but the last.

    widths[i]  = lane-padded output width of layer i (multiples of 128).
    Inter-layer activations live in two VMEM ping-pong scratch buffers; each
    layer is processed in static row chunks so the scheduler can interleave
    chunk c's tanh (EUP) with chunk c+1's matmul (MXU).
    """
    chunk_starts = tuple(range(0, tb, row_chunk))

    def kernel(*refs):
        x_ref = refs[0]
        param_refs = refs[1:1 + 2 * n_layers]   # (w0, b0, ..., w_{L-1}, b_{L-1})
        o_ref = refs[1 + 2 * n_layers]
        scr = refs[2 + 2 * n_layers:]           # () or (scr_a, scr_b)

        for li in range(n_layers):
            w = param_refs[2 * li][...]
            b = param_refs[2 * li + 1][...]     # (1, out_w) f32
            last = li == n_layers - 1
            out_w = widths[li]

            if li == 0:
                src, in_w = x_ref, in_dim
            else:
                src, in_w = scr[(li - 1) % 2], widths[li - 1]
            dst = o_ref if last else scr[li % 2]

            for c0 in chunk_starts:             # static unroll → one BB,
                csz = min(row_chunk, tb - c0)   # MXU/EUP overlap across chunks
                a = src[c0:c0 + csz, :in_w]
                if use_bf16:
                    a = a.astype(jnp.bfloat16)
                z = jnp.dot(a, w, preferred_element_type=jnp.float32) + b
                if not last:
                    z = jnp.tanh(z)
                dst[c0:c0 + csz, :out_w] = z.astype(dst.dtype)

    return kernel


# ---------------------------------------------------------------------------
# Param prep: lane-dense zero padding (done once, outside the kernel)
# ---------------------------------------------------------------------------
def _pad_params_lane_dense(params, use_bf16, hidden_pad_multiple):
    """Zero-pad every layer's output dim to a lane-dense width.

    Hidden layers: multiple of 128 (256 when >128, for the 256-wide MXUs on
    v6e/v7x).  Last layer: multiple of 128 so the output store is unmasked.
    Padded hidden lanes carry tanh(0)=0 into zero weight rows of the next
    layer, so the math is exact.  The input dim is left unpadded.
    """
    n = len(params)
    w_dtype = jnp.bfloat16 if use_bf16 else jnp.float32
    padded = []
    prev_pad = None
    for li, (w, b) in enumerate(params):
        fan_in, fan_out = w.shape
        in_pad = fan_in if prev_pad is None else prev_pad
        if li == n - 1:
            out_pad = _round_up(fan_out, 128)                 # lane-dense output
        else:
            mult = hidden_pad_multiple or (256 if fan_out > 128 else 128)
            out_pad = _round_up(fan_out, mult)
        w_p = (jnp.zeros((in_pad, out_pad), w_dtype)
               .at[:fan_in, :fan_out].set(w.astype(w_dtype)))
        b_p = (jnp.zeros((1, out_pad), jnp.float32)
               .at[:, :fan_out].set(b.reshape(1, -1).astype(jnp.float32)))
        padded.append((w_p, b_p))
        prev_pad = out_pad
    return padded


def _choose_tiling(batch, max_tile):
    """Pick (tile_rows, n_tiles).  >=2 tiles whenever the batch allows, so
    dimension_semantics=("parallel",) can split across v7x's 2 TensorCores."""
    if batch <= 16:
        return max(8, _round_up(batch, 8)), 1
    n_tiles = max(2, -(-batch // max_tile))
    tb = _round_up(-(-batch // n_tiles), 8)
    return tb, n_tiles


# ---------------------------------------------------------------------------
# Wrapper
# ---------------------------------------------------------------------------
@functools.partial(
    jax.jit, static_argnames=("batch_tile", "use_bf16", "hidden_pad_multiple"))
def block_forward(x, params, *, batch_tile=1024, use_bf16=False,
                  hidden_pad_multiple=None):
    """Pallas-backed Block.forward.

    x: (B, input_dim) f32.
    params: list of (W, b) with W (in_features, out_features), b (1, out_features);
            tanh after every layer except the last (Block.fc_linear + last_layer).
    use_bf16: run matmul operands in bf16 with f32 accumulation (faster MXU,
              slightly different numerics vs the f32 reference).
    """
    n_layers = len(params)
    padded = _pad_params_lane_dense(params, use_bf16, hidden_pad_multiple)

    B, in_dim = x.shape
    out_dim = params[-1][0].shape[1]
    out_pad = padded[-1][0].shape[1]
    widths = tuple(w.shape[1] for w, _ in padded)

    TB, n_tiles = _choose_tiling(B, batch_tile)
    B_pad = TB * n_tiles
    if B_pad != B:
        # NOTE: full HBM copy of x; padding is < 8*n_tiles rows, negligible for
        # the sizes here.  Skipped entirely when B already tiles evenly.
        x = jnp.pad(x, ((0, B_pad - B), (0, 0)))

    row_chunk = 256 if TB >= 512 else TB

    operands = [x]
    in_specs = [pl.BlockSpec((TB, in_dim), lambda i: (i, 0))]
    for w, b in padded:
        operands.extend((w, b))
        # Constant block index → weights/biases stay VMEM-resident across tiles.
        in_specs.append(pl.BlockSpec(w.shape, lambda i: (0, 0)))
        in_specs.append(pl.BlockSpec(b.shape, lambda i: (0, 0)))

    scratch_shapes = []
    if n_layers >= 2:
        scratch_w = max(widths[:-1])
        scratch_shapes = [pltpu.VMEM((TB, scratch_w), jnp.float32),
                          pltpu.VMEM((TB, scratch_w), jnp.float32)]

    out = pl.pallas_call(
        _make_block_kernel(n_layers, in_dim, widths, TB, row_chunk, use_bf16),
        out_shape=jax.ShapeDtypeStruct((B_pad, out_pad), jnp.float32),
        grid=(n_tiles,),
        in_specs=in_specs,
        out_specs=pl.BlockSpec((TB, out_pad), lambda i: (i, 0)),
        scratch_shapes=scratch_shapes,
        compiler_params=pltpu.CompilerParams(
            dimension_semantics=("parallel",),
            vmem_limit_bytes=64 * 1024 * 1024),
    )(*operands)
    return out[:B, :out_dim]


# ---------------------------------------------------------------------------
# Init + reference (mirrors nn.Linear / Block)
# ---------------------------------------------------------------------------
def init_linear(key, fan_in, fan_out):
    """Mirrors nn.Linear's U(-1/sqrt(fan_in), 1/sqrt(fan_in)) init."""
    kw, kb = jax.random.split(key)
    bound = 1.0 / jnp.sqrt(jnp.float32(fan_in))
    w = jax.random.uniform(kw, (fan_in, fan_out), jnp.float32, -bound, bound)
    b = jax.random.uniform(kb, (1, fan_out), jnp.float32, -bound, bound)
    return w, b


def make_block_params(key, input_dim, output_dim, hidden_size):
    dims = [input_dim] + list(hidden_size) + [output_dim]
    keys = jax.random.split(key, len(dims) - 1)
    return [init_linear(k, dims[i], dims[i + 1]) for i, k in enumerate(keys)]


def reference_forward(x, params):
    h = x
    for li, (w, b) in enumerate(params):
        h = h @ w + b
        if li < len(params) - 1:
            h = jnp.tanh(h)
    return h


# ---------------------------------------------------------------------------
# Demo / self-test
# ---------------------------------------------------------------------------
if __name__ == "__main__":
    key = jax.random.PRNGKey(0)
    k1, k2, k3, kp1, kp2, kp3 = jax.random.split(key, 6)

    # Case 1: small aligned batch, single tile.
    x1 = jax.random.normal(k1, (8, 16), jnp.float32)
    p1 = make_block_params(kp1, 16, 8, [32, 32])
    out1 = jax.block_until_ready(block_forward(x1, p1))
    ref1 = reference_forward(x1, p1)
    assert out1.shape == (8, 8)
    assert jnp.allclose(out1, ref1, atol=1e-5, rtol=1e-5)

    # Case 2: ragged batch + odd feature dims (batch padding, 2 parallel tiles).
    x2 = jax.random.normal(k2, (20, 24), jnp.float32)
    p2 = make_block_params(kp2, 24, 10, [48, 40])
    out2 = jax.block_until_ready(block_forward(x2, p2))
    ref2 = reference_forward(x2, p2)
    assert out2.shape == (20, 10)
    assert jnp.allclose(out2, ref2, atol=1e-5, rtol=1e-5)

    # Case 3: bigger batch exercising 2 tiles + row-chunked MXU/EUP overlap.
    x3 = jax.random.normal(k3, (1200, 32), jnp.float32)
    p3 = make_block_params(kp3, 32, 12, [64, 48])
    out3 = jax.block_until_ready(block_forward(x3, p3))
    ref3 = reference_forward(x3, p3)
    assert out3.shape == (1200, 12)
    assert jnp.allclose(out3, ref3, atol=1e-4, rtol=1e-4)

    # Case 4: gated bf16 MXU path (f32 accumulation; looser tolerance vs f32 ref).
    out4 = jax.block_until_ready(block_forward(x1, p1, use_bf16=True))
    assert out4.shape == (8, 8)
    assert jnp.allclose(out4, ref1, atol=5e-2, rtol=5e-2)

    print("KERNEL_OK")
</pallas_src>

<mosaic_0001>
module attributes {stable_mosaic.version = 11 : i64} {
  func.func @kernel(%arg0: i32, %arg1: memref<8x16xf32, #tpu.memory_space<vmem>>, %arg2: memref<16x128xf32, #tpu.memory_space<vmem>>, %arg3: memref<1x128xf32, #tpu.memory_space<vmem>>, %arg4: memref<128x128xf32, #tpu.memory_space<vmem>>, %arg5: memref<1x128xf32, #tpu.memory_space<vmem>>, %arg6: memref<128x128xf32, #tpu.memory_space<vmem>>, %arg7: memref<1x128xf32, #tpu.memory_space<vmem>>, %arg8: memref<8x128xf32, #tpu.memory_space<vmem>>, %arg9: memref<8x128xf32, #tpu.memory_space<vmem>>, %arg10: memref<8x128xf32, #tpu.memory_space<vmem>>) attributes {dimension_semantics = [#tpu.dimension_semantics<parallel>], iteration_bounds = array<i64: 1>, scalar_prefetch = 0 : i64, scratch_operands = 2 : i64, tpu.core_type = #tpu.core_type<tc>, window_params = [{transform_indices = @transform_0, window_bounds = array<i64: 8, 16>}, {pipeline_mode = #tpu.pipeline_mode<synchronous>, transform_indices = @transform_1, window_bounds = array<i64: 16, 128>}, {pipeline_mode = #tpu.pipeline_mode<synchronous>, transform_indices = @transform_2, window_bounds = array<i64: 1, 128>}, {pipeline_mode = #tpu.pipeline_mode<synchronous>, transform_indices = @transform_3, window_bounds = array<i64: 128, 128>}, {pipeline_mode = #tpu.pipeline_mode<synchronous>, transform_indices = @transform_4, window_bounds = array<i64: 1, 128>}, {pipeline_mode = #tpu.pipeline_mode<synchronous>, transform_indices = @transform_5, window_bounds = array<i64: 128, 128>}, {pipeline_mode = #tpu.pipeline_mode<synchronous>, transform_indices = @transform_6, window_bounds = array<i64: 1, 128>}, {transform_indices = @transform_7, window_bounds = array<i64: 8, 128>}]} {
    %c0 = arith.constant 0 : index
    %c0_0 = arith.constant 0 : index
    %0 = vector.load %arg2[%c0, %c0_0] : memref<16x128xf32, #tpu.memory_space<vmem>>, vector<16x128xf32>
    %c0_1 = arith.constant 0 : index
    %c0_2 = arith.constant 0 : index
    %1 = vector.load %arg3[%c0_1, %c0_2] : memref<1x128xf32, #tpu.memory_space<vmem>>, vector<1x128xf32>
    %c0_3 = arith.constant 0 : index
    %c0_4 = arith.constant 0 : index
    %2 = vector.load %arg1[%c0_3, %c0_4] : memref<8x16xf32, #tpu.memory_space<vmem>>, vector<8x16xf32>
    %cst = arith.constant dense<0.000000e+00> : vector<8x128xf32>
    %3 = tpu.matmul %2, %0, %cst {dimension_numbers = #tpu.dot_dimension_numbers<[1], [0], [0], [1], [0, 0, 1, 1], [], []>} : vector<8x16xf32>, vector<16x128xf32>, vector<8x128xf32> -> vector<8x128xf32>
    %4 = vector.broadcast %1 : vector<1x128xf32> to vector<8x128xf32>
    %5 = arith.addf %3, %4 : vector<8x128xf32>
    %6 = math.tanh %5 : vector<8x128xf32>
    %c0_5 = arith.constant 0 : index
    %c0_6 = arith.constant 0 : index
    %7 = vector.load %arg9[%c0_5, %c0_6] : memref<8x128xf32, #tpu.memory_space<vmem>>, vector<8x128xf32>
    tpu.vector_store %arg9[%c0_5, %c0_6], %6 {strides = array<i32>} : memref<8x128xf32, #tpu.memory_space<vmem>>, vector<8x128xf32>,
    %c0_7 = arith.constant 0 : index
    %c0_8 = arith.constant 0 : index
    %8 = vector.load %arg4[%c0_7, %c0_8] : memref<128x128xf32, #tpu.memory_space<vmem>>, vector<128x128xf32>
    %c0_9 = arith.constant 0 : index
    %c0_10 = arith.constant 0 : index
    %9 = vector.load %arg5[%c0_9, %c0_10] : memref<1x128xf32, #tpu.memory_space<vmem>>, vector<1x128xf32>
    %c0_11 = arith.constant 0 : index
    %c0_12 = arith.constant 0 : index
    %10 = vector.load %arg9[%c0_11, %c0_12] : memref<8x128xf32, #tpu.memory_space<vmem>>, vector<8x128xf32>
    %cst_13 = arith.constant dense<0.000000e+00> : vector<8x128xf32>
    %11 = tpu.matmul %10, %8, %cst_13 {dimension_numbers = #tpu.dot_dimension_numbers<[1], [0], [0], [1], [0, 0, 1, 1], [], []>} : vector<8x128xf32>, vector<128x128xf32>, vector<8x128xf32> -> vector<8x128xf32>
    %12 = vector.broadcast %9 : vector<1x128xf32> to vector<8x128xf32>
    %13 = arith.addf %11, %12 : vector<8x128xf32>
    %14 = math.tanh %13 : vector<8x128xf32>
    %c0_14 = arith.constant 0 : index
    %c0_15 = arith.constant 0 : index
    %15 = vector.load %arg10[%c0_14, %c0_15] : memref<8x128xf32, #tpu.memory_space<vmem>>, vector<8x128xf32>
    tpu.vector_store %arg10[%c0_14, %c0_15], %14 {strides = array<i32>} : memref<8x128xf32, #tpu.memory_space<vmem>>, vector<8x128xf32>,
    %c0_16 = arith.constant 0 : index
    %c0_17 = arith.constant 0 : index
    %16 = vector.load %arg6[%c0_16, %c0_17] : memref<128x128xf32, #tpu.memory_space<vmem>>, vector<128x128xf32>
    %c0_18 = arith.constant 0 : index
    %c0_19 = arith.constant 0 : index
    %17 = vector.load %arg7[%c0_18, %c0_19] : memref<1x128xf32, #tpu.memory_space<vmem>>, vector<1x128xf32>
    %c0_20 = arith.constant 0 : index
    %c0_21 = arith.constant 0 : index
    %18 = vector.load %arg10[%c0_20, %c0_21] : memref<8x128xf32, #tpu.memory_space<vmem>>, vector<8x128xf32>
    %cst_22 = arith.constant dense<0.000000e+00> : vector<8x128xf32>
    %19 = tpu.matmul %18, %16, %cst_22 {dimension_numbers = #tpu.dot_dimension_numbers<[1], [0], [0], [1], [0, 0, 1, 1], [], []>} : vector<8x128xf32>, vector<128x128xf32>, vector<8x128xf32> -> vector<8x128xf32>
    %20 = vector.broadcast %17 : vector<1x128xf32> to vector<8x128xf32>
    %21 = arith.addf %19, %20 : vector<8x128xf32>
    %c0_23 = arith.constant 0 : index
    %c0_24 = arith.constant 0 : index
    %22 = vector.load %arg8[%c0_23, %c0_24] : memref<8x128xf32, #tpu.memory_space<vmem>>, vector<8x128xf32>
    tpu.vector_store %arg8[%c0_23, %c0_24], %21 {strides = array<i32>} : memref<8x128xf32, #tpu.memory_space<vmem>>, vector<8x128xf32>,
    return
  }
  func.func @transform_0(%arg0: i32) -> (i32, i32) {
    %c0_i32 = arith.constant 0 : i32
    %c0_i32_0 = arith.constant 0 : i32
    return %arg0, %c0_i32 : i32, i32
  }
  func.func @transform_1(%arg0: i32) -> (i32, i32) {
    %c0_i32 = arith.constant 0 : i32
    %c0_i32_0 = arith.constant 0 : i32
    %c0_i32_1 = arith.constant 0 : i32
    return %c0_i32, %c0_i32_0 : i32, i32
  }
  func.func @transform_2(%arg0: i32) -> (i32, i32) {
    %c0_i32 = arith.constant 0 : i32
    %c0_i32_0 = arith.constant 0 : i32
    %c0_i32_1 = arith.constant 0 : i32
    return %c0_i32, %c0_i32_0 : i32, i32
  }
  func.func @transform_3(%arg0: i32) -> (i32, i32) {
    %c0_i32 = arith.constant 0 : i32
    %c0_i32_0 = arith.constant 0 : i32
    %c0_i32_1 = arith.constant 0 : i32
    return %c0_i32, %c0_i32_0 : i32, i32
  }
  func.func @transform_4(%arg0: i32) -> (i32, i32) {
    %c0_i32 = arith.constant 0 : i32
    %c0_i32_0 = arith.constant 0 : i32
    %c0_i32_1 = arith.constant 0 : i32
    return %c0_i32, %c0_i32_0 : i32, i32
  }
  func.func @transform_5(%arg0: i32) -> (i32, i32) {
    %c0_i32 = arith.constant 0 : i32
    %c0_i32_0 = arith.constant 0 : i32
    %c0_i32_1 = arith.constant 0 : i32
    return %c0_i32, %c0_i32_0 : i32, i32
  }
  func.func @transform_6(%arg0: i32) -> (i32, i32) {
    %c0_i32 = arith.constant 0 : i32
    %c0_i32_0 = arith.constant 0 : i32
    %c0_i32_1 = arith.constant 0 : i32
    return %c0_i32, %c0_i32_0 : i32, i32
  }
  func.func @transform_7(%arg0: i32) -> (i32, i32) {
    %c0_i32 = arith.constant 0 : i32
    %c0_i32_0 = arith.constant 0 : i32
    return %arg0, %c0_i32 : i32, i32
  }
}

</mosaic_0001>

<bundles_post_ra>
// kernel: block_forward.1
= control target key start
LH: loop header
LB: loop body
LE: loop exit
PB: predicated region body
PF: predicated region fallthrough
CT: control target
= control target key end

     0   :  { %vm34_vm0 = vcmask 130048   ;;  %s354_s0 = inlined_call_operand.vmem [shape: f32[8,16], index: 0, kind: input, shape index: {}]   ;;  %s355_s1 = inlined_call_operand.vmem [shape: f32[16,128], index: 1, kind: input, shape index: {}]   ;;  %s356_s2 = inlined_call_operand.vmem [shape: f32[1,128], index: 2, kind: input, shape index: {}]   ;;  %s357_s3 = inlined_call_operand.vmem [shape: f32[128,128], index: 3, kind: input, shape index: {}]   ;;  %s358_s4 = inlined_call_operand.vmem [shape: f32[1,128], index: 4, kind: input, shape index: {}]   ;;  %s359_s5 = inlined_call_operand.vmem [shape: f32[128,128], index: 5, kind: input, shape index: {}]   ;;  %s360_s6 = inlined_call_operand.vmem [shape: f32[1,128], index: 6, kind: input, shape index: {}]   ;;  %s361_s7 = inlined_call_operand.hbm [shape: f32[8,128], index: 7, kind: output, shape index: {}]  }
   0x1   :  { %v28_v0 = vld [vmem:[%s355_s1 + $0x8] sm:$0xff]  ;;  %v27_v1 = vld [vmem:[%s355_s1] sm:$0xff]  ;;  %v75_v3 = vld [vmem:[%s357_s3 + $0x78] sm:$0xff] }
   0x2   :  { %52 = vmatpush.msra.mxu0 %v28_v0  ;;  %v30_v2 = vld [vmem:[%s354_s0] sm:$0xff]  ;;  %v74_v4 = vld [vmem:[%s357_s3 + $0x70] sm:$0xff]  ;;  %81 = vmatpush.msra.mxu1 %v75_v3  ;;  %v73_v5 = vld [vmem:[%s357_s3 + $0x68] sm:$0xff] }
   0x3   :  { %v72_v6 = vld [vmem:[%s357_s3 + $0x60] sm:$0xff] }
   0x4   :  { %53 = vmatpush.msra.mxu0 %v27_v1  ;;  %82 = vmatpush.msra.mxu1 %v74_v4 }
   0x5   :  { %161 = vmatmul.msk.f32.vlgmr.msra.gmra.mxu0 %vm34_vm0, %v30_v2 }
   0x6   :  { %83 = vmatpush.msra.mxu1 %v73_v5 }
   0x7   :  { %12 = vsyncpa [#allocation5], 0  ;;  %v71_v7 = vld [vmem:[%s357_s3 + $0x58] sm:$0xff]  ;;  %v70_v8 = vld [vmem:[%s357_s3 + $0x50] sm:$0xff]  ;;  %s196_s22 = smov [#allocation4]  }
   0x8   :  { %84 = vmatpush.msra.mxu1 %v72_v6  ;;  %v69_v9 = vld [vmem:[%s357_s3 + $0x48] sm:$0xff]  ;;  %v68_v10 = vld [vmem:[%s357_s3 + $0x40] sm:$0xff]  ;;  %v67_v11 = vld [vmem:[%s357_s3 + $0x38] sm:$0xff]  ;;  %s150_s23 = sshll.u32 %s196_s22, 4  ;;  %s151_s23 = int_to_ptr.vmem [resolvable:$true] %s150_s23 }
   0x9   :  { %v66_v12 = vld [vmem:[%s357_s3 + $0x30] sm:$0xff]  ;;  %v65_v13 = vld [vmem:[%s357_s3 + $0x28] sm:$0xff]  ;;  %v64_v14 = vld [vmem:[%s357_s3 + $0x20] sm:$0xff] }
   0xa   :  { %85 = vmatpush.msra.mxu1 %v71_v7  ;;  %v63_v15 = vld [vmem:[%s357_s3 + $0x18] sm:$0xff]  ;;  %v62_v16 = vld [vmem:[%s357_s3 + $0x10] sm:$0xff]  ;;  %v61_v17 = vld [vmem:[%s357_s3 + $0x8] sm:$0xff] }
   0xb   :  { %v60_v18 = vld [vmem:[%s357_s3] sm:$0xff]  ;;  %v118_v19 = vld [vmem:[%s359_s5 + $0x78] sm:$0xff]  ;;  %v117_v20 = vld [vmem:[%s359_s5 + $0x70] sm:$0xff] }
   0xc   :  { %86 = vmatpush.msra.mxu1 %v70_v8  ;;  %124 = vmatpush.msra.mxu2 %v118_v19  ;;  %v116_v21 = vld [vmem:[%s359_s5 + $0x68] sm:$0xff]  ;;  %v115_v22 = vld [vmem:[%s359_s5 + $0x60] sm:$0xff]  ;;  %v114_v23 = vld [vmem:[%s359_s5 + $0x58] sm:$0xff] }
   0xd   :  { %v113_v24 = vld [vmem:[%s359_s5 + $0x50] sm:$0xff]  ;;  %v112_v25 = vld [vmem:[%s359_s5 + $0x48] sm:$0xff]  ;;  %v111_v26 = vld [vmem:[%s359_s5 + $0x40] sm:$0xff] }
   0xe   :  { %87 = vmatpush.msra.mxu1 %v69_v9  ;;  %125 = vmatpush.msra.mxu2 %v117_v20  ;;  %v110_v27 = vld [vmem:[%s359_s5 + $0x38] sm:$0xff]  ;;  %v109_v28 = vld [vmem:[%s359_s5 + $0x30] sm:$0xff]  ;;  %v108_v29 = vld [vmem:[%s359_s5 + $0x28] sm:$0xff] }
   0xf   :  { %v163_v30 = vld [vmem:[%s356_s2] ss:$0 sm:$0xff]  ;;  %v106_v35 = vld [vmem:[%s359_s5 + $0x18] sm:$0xff]  ;;  %v105_v36 = vld [vmem:[%s359_s5 + $0x10] sm:$0xff] }
  0x10   :  { %88 = vmatpush.msra.mxu1 %v68_v10  ;;  %126 = vmatpush.msra.mxu2 %v116_v21  ;;  %v107_v34 = vld [vmem:[%s359_s5 + $0x20] sm:$0xff]  ;;  %v104_v37 = vld [vmem:[%s359_s5 + $0x8] sm:$0xff] }
  0x11   :  { %v103_v38 = vld [vmem:[%s359_s5] sm:$0xff]  ;;  %s152_s5 = sshll.u32 %s361_s7, 4  ;;  %s153_s5 = int_to_ptr.hbm [resolvable:$true] %s152_s5 }
  0x12   :  { %89 = vmatpush.msra.mxu1 %v67_v11  ;;  %127 = vmatpush.msra.mxu2 %v115_v22  ;;  %v164_v39 = vld [vmem:[%s358_s4] ss:$0 sm:$0xff] }
  0x13   :  { %v165_v43 = vld [vmem:[%s360_s6] ss:$0 sm:$0xff] }
  0x14   :  { %90 = vmatpush.msra.mxu1 %v66_v12  ;;  %128 = vmatpush.msra.mxu2 %v114_v23 }
  0x16   :  { %91 = vmatpush.msra.mxu1 %v65_v13  ;;  %129 = vmatpush.msra.mxu2 %v113_v24 }
  0x18   :  { %92 = vmatpush.msra.mxu1 %v64_v14  ;;  %130 = vmatpush.msra.mxu2 %v112_v25 }
  0x1a   :  { %93 = vmatpush.msra.mxu1 %v63_v15  ;;  %131 = vmatpush.msra.mxu2 %v111_v26 }
  0x1c   :  { %94 = vmatpush.msra.mxu1 %v62_v16  ;;  %132 = vmatpush.msra.mxu2 %v110_v27 }
  0x1e   :  { %95 = vmatpush.msra.mxu1 %v61_v17  ;;  %133 = vmatpush.msra.mxu2 %v109_v28 }
  0x20   :  { %96 = vmatpush.msra.mxu1 %v60_v18  ;;  %134 = vmatpush.msra.mxu2 %v108_v29 }
  0x22   :  { %135 = vmatpush.msra.mxu2 %v107_v34 }
  0x24   :  { %136 = vmatpush.msra.mxu2 %v106_v35 }
  0x26   :  { %137 = vmatpush.msra.mxu2 %v105_v36 }
  0x28   :  { %138 = vmatpush.msra.mxu2 %v104_v37 }
  0x2a   :  { %139 = vmatpush.msra.mxu2 %v103_v38 }
  0x82   :  { %v55_v31 = vpop.f32.mrf.mxu0 }
  0x83   :  { %v56_v32 = vadd.f32 %v163_v30, %v55_v31 }
  0x85   :  { %166 = vtanh.f32 %v56_v32 }
  0x8b   :  { %v167_v33 = vpop.eup %166 }
  0x8c   :  { %97 = vmatmul.f32.vlgmr.msra.gmra.mxu1 %v167_v33 }
 0x109   :  { %v98_v40 = vpop.f32.mrf.mxu1 }
 0x10a   :  { %v99_v41 = vadd.f32 %v164_v39, %v98_v40 }
 0x10c   :  { %168 = vtanh.f32 %v99_v41 }
 0x112   :  { %v169_v42 = vpop.eup %168 }
 0x113   :  { %140 = vmatmul.f32.vlgmr.msra.gmra.mxu2 %v169_v42 }
 0x196   :  { %v141_v44 = vpop.f32.mrf.mxu2 }
 0x197   :  { %v142_v45 = vadd.f32 %v165_v43, %v141_v44 }
 0x199   :  { %144 = vst [vmem:[#allocation4] sm:$0xff] %v142_v45 }
 0x19a   :  { %155 = dma.vmem_to_hbm [thread:$0]  %s151_s23, 128, %s153_s5, [#allocation5]  }
 0x19b   :  { %194 = dma.done.wait [#allocation5], 128  }
 0x19c   :  { %195 = vsyncadd [#allocation5], 4294967168 }
 0x19d   :  { %160 = vsyncpa [#allocation5], 1 }

</bundles_post_ra>
